<compile_context>
chip_gen: v7x
topology: tpu7x:2x2x1
jax: 0.10.0
libtpu: 0.0.40
codegen_flags: <defaults>
</compile_context>

<pallas_src>
import math
import functools

import jax
import jax.numpy as jnp
from jax.experimental import pallas as pl
from jax.experimental.pallas import tpu as pltpu


def _round_up(x, m):
    return (x + m - 1) // m * m


def _nalu_kernel(x_ref, wg_ref, out_ref, *, space, epsilon, tb, out_pad):
    """One batch tile of the NALU forward.

    x_ref   : (TB, IN)          f32
    wg_ref  : (IN, 2*OUT_PAD)   f32   columns [0:OUT_PAD]=W, [OUT_PAD:]=G
    out_ref : (TB, OUT_PAD)     f32
    """
    x = x_ref[...]

    # Transformed input for the multiplicative path.
    if space == "log":
        xt = jnp.log(jnp.abs(x) + epsilon)
    else:  # 'asinh'  (stable form of log(x + sqrt(x^2 + 1)))
        xt = jnp.arcsinh(x)

    # Single fused MXU pass: [x ; xt] @ [W | G].
    xcat = jnp.concatenate([x, xt], axis=0)                  # (2*TB, IN)
    y = jnp.dot(xcat, wg_ref[...], preferred_element_type=jnp.float32)

    a = y[:tb, :out_pad]                                     # x  @ W
    g = jax.nn.sigmoid(y[:tb, out_pad:])                     # sigmoid(x @ G)
    mp = y[tb:, :out_pad]                                    # xt @ W

    m = jnp.exp(mp) if space == "log" else jnp.sinh(mp)

    # g*a + (1-g)*m, with one fewer multiply.
    out_ref[...] = m + g * (a - m)


def nalu_forward(x, W_hat, M_hat, G, *, space="log", epsilon=1e-7, tb=256):
    """NALU forward. x: (B, IN); W_hat/M_hat/G: (OUT, IN) (PyTorch convention)."""
    if space not in ("log", "asinh"):
        raise ValueError(f"{space!r} is not a valid value for space")

    x = jnp.asarray(x, jnp.float32)
    B, IN = x.shape
    OUT = W_hat.shape[0]

    # Lane-dense output: pad OUT to a multiple of 128 lanes.
    out_pad = _round_up(OUT, 128)
    # Batch tile: multiple of 8 sublanes, no larger than the padded batch.
    tb = max(8, min(_round_up(tb, 8), _round_up(B, 8)))
    b_pad = _round_up(B, tb)

    # Precompute the effective additive weight once (outside the grid) and fuse
    # [W | G] along the OUT axis, pre-transposed to (IN, 2*OUT_PAD).
    W_hat = jnp.asarray(W_hat, jnp.float32)
    M_hat = jnp.asarray(M_hat, jnp.float32)
    G = jnp.asarray(G, jnp.float32)
    W = jnp.tanh(W_hat) * jax.nn.sigmoid(M_hat)              # (OUT, IN)
    W_p = jnp.pad(W, ((0, out_pad - OUT), (0, 0)))
    G_p = jnp.pad(G, ((0, out_pad - OUT), (0, 0)))
    wg = jnp.concatenate([W_p, G_p], axis=0).T               # (IN, 2*OUT_PAD)

    x_p = jnp.pad(x, ((0, b_pad - B), (0, 0)))               # (B_PAD, IN)

    kernel = functools.partial(
        _nalu_kernel, space=space, epsilon=epsilon, tb=tb, out_pad=out_pad)

    grid = (b_pad // tb,)
    cost = pl.CostEstimate(
        flops=2 * (2 * b_pad) * IN * (2 * out_pad),
        transcendentals=b_pad * (IN + 3 * out_pad),
        bytes_accessed=4 * (b_pad * IN + IN * 2 * out_pad + b_pad * out_pad),
    )

    out = pl.pallas_call(
        kernel,
        out_shape=jax.ShapeDtypeStruct((b_pad, out_pad), jnp.float32),
        grid_spec=pltpu.PrefetchScalarGridSpec(
            num_scalar_prefetch=0,
            grid=grid,
            in_specs=[
                pl.BlockSpec((tb, IN), lambda i: (i, 0)),            # x tile
                pl.BlockSpec((IN, 2 * out_pad), lambda i: (0, 0)),   # [W|G] resident
            ],
            out_specs=pl.BlockSpec((tb, out_pad), lambda i: (i, 0)),
        ),
        compiler_params=pltpu.CompilerParams(
            dimension_semantics=("parallel",)),
        cost_estimate=cost,
    )(x_p, wg)

    return out[:B, :OUT]


def nalu_reference(x, W_hat, M_hat, G, *, space="log", epsilon=1e-7):
    """Pure-JAX reference matching the PyTorch forward exactly."""
    g = jax.nn.sigmoid(x @ G.T)
    W = jnp.tanh(W_hat) * jax.nn.sigmoid(M_hat)
    a = x @ W.T
    if space == "log":
        m = jnp.exp(jnp.log(jnp.abs(x) + epsilon) @ W.T)
    else:
        m = jnp.sinh(jnp.log(x + jnp.sqrt(x * x + 1.0)) @ W.T)
    return g * a + (1.0 - g) * m


if __name__ == "__main__":
    in_features = 32
    out_features = 16
    batch = 8
    epsilon = 1e-7

    key = jax.random.PRNGKey(0)
    k_x, k_w, k_m, k_g = jax.random.split(key, 4)

    # reset_parameters(): W_hat, M_hat ~ U(-stdv, stdv), stdv = 1/sqrt(in_features).
    # G is torch.empty (uninitialized); initialize it deterministically here too.
    stdv = 1.0 / math.sqrt(in_features)
    W_hat = jax.random.uniform(k_w, (out_features, in_features),
                               jnp.float32, -stdv, stdv)
    M_hat = jax.random.uniform(k_m, (out_features, in_features),
                               jnp.float32, -stdv, stdv)
    G = jax.random.uniform(k_g, (out_features, in_features),
                           jnp.float32, -stdv, stdv)

    x = jax.random.normal(k_x, (batch, in_features), jnp.float32)

    for space in ("log", "asinh"):
        out = nalu_forward(x, W_hat, M_hat, G, space=space, epsilon=epsilon)
        out = jax.block_until_ready(out)
        ref = nalu_reference(x, W_hat, M_hat, G, space=space, epsilon=epsilon)
        assert out.shape == (batch, out_features)
        assert jnp.allclose(out, ref, atol=1e-5, rtol=1e-5), f"mismatch ({space})"

    print("KERNEL_OK")
</pallas_src>

<mosaic_0001>
module attributes {stable_mosaic.version = 11 : i64} {
  func.func @_nalu_kernel(%arg0: i32, %arg1: memref<8x32xf32, #tpu.memory_space<vmem>>, %arg2: memref<32x256xf32, #tpu.memory_space<vmem>>, %arg3: memref<8x128xf32, #tpu.memory_space<vmem>>) attributes {dimension_semantics = [#tpu.dimension_semantics<parallel>], iteration_bounds = array<i64: 1>, scalar_prefetch = 0 : i64, scratch_operands = 0 : i64, tpu.core_type = #tpu.core_type<tc>, window_params = [{transform_indices = @transform_0, window_bounds = array<i64: 8, 32>}, {pipeline_mode = #tpu.pipeline_mode<synchronous>, transform_indices = @transform_1, window_bounds = array<i64: 32, 256>}, {transform_indices = @transform_2, window_bounds = array<i64: 8, 128>}]} {
    %c0 = arith.constant 0 : index
    %c0_0 = arith.constant 0 : index
    %0 = vector.load %arg1[%c0, %c0_0] : memref<8x32xf32, #tpu.memory_space<vmem>>, vector<8x32xf32>
    %1 = math.absf %0 : vector<8x32xf32>
    %cst = arith.constant 1.000000e-07 : f32
    %2 = vector.broadcast %cst : f32 to vector<8x32xf32>
    %3 = arith.addf %1, %2 : vector<8x32xf32>
    %4 = math.log %3 : vector<8x32xf32>
    %5 = tpu.concatenate %0, %4 in 0 : vector<8x32xf32>, vector<8x32xf32> -> vector<16x32xf32>
    %c0_1 = arith.constant 0 : index
    %c0_2 = arith.constant 0 : index
    %6 = vector.load %arg2[%c0_1, %c0_2] : memref<32x256xf32, #tpu.memory_space<vmem>>, vector<32x256xf32>
    %cst_3 = arith.constant dense<0.000000e+00> : vector<16x256xf32>
    %7 = tpu.matmul %5, %6, %cst_3 {dimension_numbers = #tpu.dot_dimension_numbers<[1], [0], [0], [1], [0, 0, 1, 1], [], []>} : vector<16x32xf32>, vector<32x256xf32>, vector<16x256xf32> -> vector<16x256xf32>
    %8 = vector.extract_strided_slice %7 {offsets = [0, 0], sizes = [8, 128], strides = [1, 1]} : vector<16x256xf32> to vector<8x128xf32>
    %9 = vector.extract_strided_slice %7 {offsets = [0, 128], sizes = [8, 128], strides = [1, 1]} : vector<16x256xf32> to vector<8x128xf32>
    %10 = arith.negf %9 : vector<8x128xf32>
    %11 = math.exp %10 : vector<8x128xf32>
    %cst_4 = arith.constant 1.000000e+00 : f32
    %12 = vector.broadcast %cst_4 : f32 to vector<8x128xf32>
    %13 = arith.addf %12, %11 : vector<8x128xf32>
    %14 = arith.divf %12, %13 : vector<8x128xf32>
    %15 = vector.extract_strided_slice %7 {offsets = [8, 0], sizes = [8, 128], strides = [1, 1]} : vector<16x256xf32> to vector<8x128xf32>
    %16 = math.exp %15 : vector<8x128xf32>
    %17 = arith.subf %8, %16 : vector<8x128xf32>
    %18 = arith.mulf %14, %17 : vector<8x128xf32>
    %19 = arith.addf %16, %18 : vector<8x128xf32>
    %c0_5 = arith.constant 0 : index
    %c0_6 = arith.constant 0 : index
    %20 = vector.load %arg3[%c0_5, %c0_6] : memref<8x128xf32, #tpu.memory_space<vmem>>, vector<8x128xf32>
    tpu.vector_store %arg3[%c0_5, %c0_6], %19 {strides = array<i32>} : memref<8x128xf32, #tpu.memory_space<vmem>>, vector<8x128xf32>,
    return
  }
  func.func @transform_0(%arg0: i32) -> (i32, i32) {
    %c0_i32 = arith.constant 0 : i32
    %c0_i32_0 = arith.constant 0 : i32
    return %arg0, %c0_i32 : i32, i32
  }
  func.func @transform_1(%arg0: i32) -> (i32, i32) {
    %c0_i32 = arith.constant 0 : i32
    %c0_i32_0 = arith.constant 0 : i32
    %c0_i32_1 = arith.constant 0 : i32
    return %c0_i32, %c0_i32_0 : i32, i32
  }
  func.func @transform_2(%arg0: i32) -> (i32, i32) {
    %c0_i32 = arith.constant 0 : i32
    %c0_i32_0 = arith.constant 0 : i32
    return %arg0, %c0_i32 : i32, i32
  }
}

</mosaic_0001>

<bundles_post_ra>
// kernel: tpu_custom_call.1
= control target key start
LH: loop header
LB: loop body
LE: loop exit
PB: predicated region body
PF: predicated region fallthrough
CT: control target
= control target key end

     0   :  { %7 = vsyncpa [#allocation3], 0  ;;  %s327_s0 = inlined_call_operand.hbm [shape: f32[8,32], index: 0, kind: input, shape index: {}]   ;;  %s328_s1 = inlined_call_operand.hbm [shape: f32[32,256], index: 1, kind: input, shape index: {}]   ;;  %s329_s2 = inlined_call_operand.hbm [shape: f32[8,128], index: 2, kind: output, shape index: {}]  }
   0x1   :  { %8 = vsyncpa [#allocation6], 0 }
   0x2   :  { %9 = vsyncpa [#allocation4], 0  ;;  %s263_s9 = smov [#allocation2]   ;;  %s264_s11 = smov [#allocation5]  }
   0x3   :  { %s16_s10 = sshll.u32 %s263_s9, 4  ;;  %s25_s12 = sshll.u32 %s264_s11, 4  ;;  %s17_s10 = int_to_ptr.vmem [resolvable:$true] %s16_s10  ;;  %s284_s12 = int_to_ptr.vmem [resolvable:$true] %s25_s12 }
   0x4   :  { %s191_s15 = scalar_lea.hbm %s327_s0, 128 }
   0x5   :  { %p192_p0 = scmp.ne.s32.totalorder %s327_s0, %s191_s15  ;;  %p195_p1 = scmp.lt.u32.totalorder %s191_s15, %s327_s0 }
   0x7   :  { %p197_p2 = pnand %p195_p1, %p192_p0 }
   0x9   :  { %200 = shalt.err (!%p197_p2)
}
   0xa   :  { %s201_s20 = scalar_lea.vmem %s17_s10, 128  ;;  %p206_p4 = scmp.lt.s32.totalorder %s17_s10, %s17_s10 }
   0xb   :  { %p202_p3 = scmp.ne.s32.totalorder %s17_s10, %s201_s20  ;;  %p207_p5 = scmp.lt.s32.totalorder %s201_s20, %s201_s20 }
   0xd   :  { %p208_p6 = por %p207_p5, %p206_p4 }
   0xf   :  { %p209_p7 = pnand %p208_p6, %p202_p3 }
  0x11   :  { %212 = shalt.err (!%p209_p7)
}
  0x12   :  { %19 = dma.hbm_to_vmem [thread:$0]  %s327_s0, 128, %s17_s10, [#allocation3]  }
  0x13   :  { %s213_s25 = scalar_lea.hbm %s328_s1, 1024 }
  0x14   :  { %p214_p8 = scmp.ne.s32.totalorder %s328_s1, %s213_s25  ;;  %p217_p9 = scmp.lt.u32.totalorder %s213_s25, %s328_s1 }
  0x16   :  { %p219_p10 = pnand %p217_p9, %p214_p8 }
  0x18   :  { %222 = shalt.err (!%p219_p10)
}
  0x19   :  { %s223_s30 = scalar_lea.vmem %s284_s12, 1024  ;;  %p228_p12 = scmp.lt.s32.totalorder %s284_s12, %s284_s12 }
  0x1a   :  { %p224_p11 = scmp.ne.s32.totalorder %s284_s12, %s223_s30  ;;  %p229_p13 = scmp.lt.s32.totalorder %s223_s30, %s223_s30 }
  0x1c   :  { %p230_p0 = por %p229_p13, %p228_p12 }
  0x1e   :  { %p231_p1 = pnand %p230_p0, %p224_p11 }
  0x20   :  { %234 = shalt.err (!%p231_p1)
}
  0x21   :  { %s265_s0 = smov 256   ;;  %s266_s3 = smov 16  }
  0x22   :  { %31 = dma.hbm_to_vmem [thread:$0]  %s328_s1, 1024, %s284_s12, [#allocation6], %s265_s0, %s265_s0, %s266_s3  }
  0x23   :  { %257 = dma.done.wait [#allocation3], 128  }
  0x24   :  { %258 = vsyncadd [#allocation3], 4294967168 }
  0x25   :  { %259 = dma.done.wait [#allocation6], 1024  }
  0x26   :  { %260 = vsyncadd [#allocation6], 4294966272  ;;  %v267_v0 = vmov 0.0   ;;  %v44_v1 = vld [vmem:[#allocation5 + $0x8] sm:$0xff]  ;;  %v46_v2 = vld [vmem:[#allocation5 + $0x18] sm:$0xff]  ;;  %vm51_vm0 = vcmask 261120  }
  0x27   :  { %122 = vmatprep.mubr.f32.mxu0 %v267_v0  ;;  %128 = vmatprep.mubr.f32.mxu1 %v267_v0  ;;  %v43_v3 = vld [vmem:[#allocation5] sm:$0xff]  ;;  %v165_v4 = vpack.c.bf16 %v46_v2, %v44_v1  ;;  %v45_v5 = vld [vmem:[#allocation5 + $0x10] sm:$0xff]  ;;  %v48_v6 = vld [vmem:[#allocation5 + $0x28] sm:$0xff]  ;;  %s268_s1 = smov [#allocation7]  }
  0x28   :  { %v50_v7 = vld [vmem:[#allocation5 + $0x38] sm:$0xff]  ;;  %v167_v8 = vpack.c.bf16 %v45_v5, %v43_v3  ;;  %v47_v10 = vld [vmem:[#allocation5 + $0x20] sm:$0xff]  ;;  %v49_v11 = vld [vmem:[#allocation5 + $0x30] sm:$0xff]  ;;  %s152_s6 = sshll.u32 %s268_s1, 4  ;;  %s153_s6 = int_to_ptr.vmem [resolvable:$true] %s152_s6 }
  0x29   :  { %v169_v9 = vpack.c.bf16 %v50_v7, %v48_v6  ;;  %v38_v12 = vld [vmem:[#allocation2] sm:$0xff]  ;;  %166 = vmatprep.subr.bf16.mxu0 %v165_v4  ;;  %173 = vmatprep.subr.bf16.mxu1 %v165_v4  ;;  %v171_v14 = vpack.c.bf16 %v49_v11, %v47_v10  ;;  %s235_s7 = scalar_lea.vmem %s153_s6, 128  ;;  %p240_p3 = scmp.lt.s32.totalorder %s153_s6, %s153_s6 }
  0x2a   :  { %v39_v13 = vand.u32 2147483647, %v38_v12  ;;  %168 = vmatpush1.bf16.msra.mxu0 %v167_v8  ;;  %175 = vmatpush1.bf16.msra.mxu1 %v167_v8  ;;  %p236_p2 = scmp.ne.s32.totalorder %s153_s6, %s235_s7  ;;  %p241_p4 = scmp.lt.s32.totalorder %s235_s7, %s235_s7 }
  0x2b   :  { %170 = vmatprep.subr.bf16.mxu0 %v169_v9  ;;  %174 = vmatprep.subr.bf16.mxu1 %v169_v9 }
  0x2c   :  { %v40_v15 = vadd.f32 1e-07, %v39_v13  ;;  %p242_p5 = por %p241_p4, %p240_p3 }
  0x2e   :  { %183 = vlog2.f32 %v40_v15  ;;  %172 = vmatpush1.bf16.msra.mxu0 %v171_v14  ;;  %176 = vmatpush1.bf16.msra.mxu1 %v171_v14  ;;  %p243_p6 = pnand %p242_p5, %p236_p2 }
  0x31   :  { %162 = vmatmul.mubr.msk.f32.vlgmr.msra.gmra.mrb[0].mxu0 %vm51_vm0, %v38_v12 }
  0x38   :  { %v184_v16 = vpop.eup %183 }
  0x39   :  { %v42_v17 = vmul.f32 0.6931472, %v184_v16 }
  0x3b   :  { %163 = vmatmul.mubr.msk.f32.vlgmr.msra.gmra.mrb[0].mxu1 %vm51_vm0, %v42_v17 }
 0x104   :  { %v124_v18 = vpop.f32.mrb[0].mxu0 }
 0x105   :  { %v126_v19 = vpop.f32.mrb[1].mxu0 }
 0x106   :  { %v164_v20 = vmul.f32 -1.442695, %v126_v19 }
 0x108   :  { %185 = vpow2.f32 %v164_v20 }
 0x10e   :  { %v130_v21 = vpop.f32.mrb[0].mxu1 }
 0x10f   :  { %v140_v22 = vmul.f32 1.442695, %v130_v21  ;;  %v132_v23 = vpop.f32.mrb[1].mxu1 }
 0x111   :  { %187 = vpow2.f32 %v140_v22 }
 0x112   :  { %v186_v24 = vpop.eup %185 }
 0x113   :  { %v137_v25 = vadd.f32 1.0, %v186_v24 }
 0x115   :  { %189 = vrcp.f32 %v137_v25 }
 0x11b   :  { %v188_v26 = vpop.eup %187 }
 0x11c   :  { %v142_v27 = vsub.f32 %v124_v18, %v188_v26 }
 0x11f   :  { %v190_v28 = vpop.eup %189 }
 0x120   :  { %v143_v29 = vmul.f32 %v190_v28, %v142_v27 }
 0x122   :  { %v144_v30 = vadd.f32 %v188_v26, %v143_v29 }
 0x124   :  { %145 = vst [vmem:[#allocation7] sm:$0xff] %v144_v30 }
 0x125   :  { %246 = shalt.err (!%p243_p6)
}
 0x126   :  { %s247_s10 = scalar_lea.hbm %s329_s2, 128 }
 0x127   :  { %p248_p7 = scmp.ne.s32.totalorder %s329_s2, %s247_s10  ;;  %p251_p8 = scmp.lt.u32.totalorder %s247_s10, %s329_s2 }
 0x129   :  { %p253_p9 = pnand %p251_p8, %p248_p7 }
 0x12b   :  { %256 = shalt.err (!%p253_p9)
}
 0x12c   :  { %155 = dma.vmem_to_hbm [thread:$0]  %s153_s6, 128, %s329_s2, [#allocation4]  }
 0x12d   :  { %261 = dma.done.wait [#allocation4], 128  }
 0x12e   :  { %262 = vsyncadd [#allocation4], 4294967168 }
 0x12f   :  { %159 = vsyncpa [#allocation3], 1 }
 0x130   :  { %160 = vsyncpa [#allocation6], 1 }
 0x131   :  { %161 = vsyncpa [#allocation4], 1 }

</bundles_post_ra>
